<compile_context>
chip_gen: v5e
topology: v5e:2x2
jax: 0.10.0
libtpu: 0.0.40
codegen_flags: <defaults>
</compile_context>

<pallas_src>
import jax
import jax.numpy as jnp
from jax.experimental import pallas as pl
from jax.experimental.pallas import tpu as pltpu


def _round_up(n, m):
    return ((n + m - 1) // m) * m


def _mlp_kernel(x_ref, w1_ref, w2_ref, w3_ref, w4_ref, b_ref, o_ref):
    """Fused 4-layer MLP: (Linear+foldedBN -> ReLU) x3 -> Linear.

    x_ref:  [TB, in]   bf16 (pre-cast in wrapper)
    w*_ref: bf16 weights, lane-padded to F=128 columns, VMEM-resident
    b_ref:  [4, F]     f32 packed (BN-folded) biases
    o_ref:  [TB, num_classes] f32 — only the real logit columns are written to HBM.
    """
    x = x_ref[...]
    b = b_ref[...]

    h = jnp.dot(x, w1_ref[...], preferred_element_type=jnp.float32)
    h = jnp.maximum(h + b[0:1, :], 0.0)                     # Dropout(0.3) -> identity (eval)

    h = jnp.dot(h.astype(jnp.bfloat16), w2_ref[...],
                preferred_element_type=jnp.float32)
    h = jnp.maximum(h + b[1:2, :], 0.0)                     # Dropout(0.2) -> identity (eval)

    h = jnp.dot(h.astype(jnp.bfloat16), w3_ref[...],
                preferred_element_type=jnp.float32)
    h = jnp.maximum(h + b[2:3, :], 0.0)                     # Dropout(0.1) -> identity (eval)

    logits = jnp.dot(h.astype(jnp.bfloat16), w4_ref[...],
                     preferred_element_type=jnp.float32) + b[3:4, :]
    o_ref[...] = logits[:, :o_ref.shape[1]]                 # narrow HBM writeback


def _xavier_uniform(key, fan_in, fan_out):
    limit = (6.0 / (fan_in + fan_out)) ** 0.5
    return jax.random.uniform(key, (fan_in, fan_out), jnp.float32, -limit, limit)


def make_params(input_size=8, hidden_size=128, num_classes=4, seed=0, eps=1e-5):
    """Mirror FinalPhysicsNet.__init__, fold BN (eval stats), pad to lane width, pack biases.

    NOTE: BN is folded with the *default* eval statistics (gamma=1, beta=0,
    running_mean=0, running_var=1).  For a trained checkpoint, pass the real
    running stats / affine params into bn_fold instead.

    Returns (w1, w2, w3, w4, b_packed): weights bf16 [in, F] / [F, F], b_packed f32 [4, F].
    """
    key = jax.random.PRNGKey(seed)
    k1, k2, k3, k4 = jax.random.split(key, 4)
    h2 = hidden_size // 2
    F = _round_up(max(hidden_size, h2, num_classes), 128)

    # Linear weights (xavier uniform), zero biases — stored as [in, out].
    w1 = _xavier_uniform(k1, input_size, hidden_size)
    w2 = _xavier_uniform(k2, hidden_size, hidden_size)
    w3 = _xavier_uniform(k3, hidden_size, h2)
    w4 = _xavier_uniform(k4, h2, num_classes)
    b1 = jnp.zeros((hidden_size,), jnp.float32)
    b2 = jnp.zeros((hidden_size,), jnp.float32)
    b3 = jnp.zeros((h2,), jnp.float32)
    b4 = jnp.zeros((num_classes,), jnp.float32)

    # BatchNorm1d eval defaults: gamma=1, beta=0, running_mean=0, running_var=1.
    def bn_fold(w, b, n):
        gamma = jnp.ones((n,), jnp.float32)
        beta = jnp.zeros((n,), jnp.float32)
        rmean = jnp.zeros((n,), jnp.float32)
        rvar = jnp.ones((n,), jnp.float32)
        scale = gamma / jnp.sqrt(rvar + eps)
        shift = beta - rmean * scale
        return w * scale[None, :], b * scale + shift

    w1, b1 = bn_fold(w1, b1, hidden_size)
    w2, b2 = bn_fold(w2, b2, hidden_size)
    w3, b3 = bn_fold(w3, b3, h2)
    # Final Linear has no BN.

    # Zero-pad every layer to [*, F] (and inputs of later layers to [F, *]);
    # padded lanes carry exact zeros through ReLU, so results are unchanged.
    def pad_w(w, rows, cols):
        return jnp.pad(w, ((0, rows - w.shape[0]), (0, cols - w.shape[1])))

    w1p = pad_w(w1, input_size, F)
    w2p = pad_w(w2, F, F)
    w3p = pad_w(w3, F, F)
    w4p = pad_w(w4, F, F)

    def pad_b(b):
        return jnp.pad(b, (0, F - b.shape[0]))

    b_packed = jnp.stack([pad_b(b1), pad_b(b2), pad_b(b3), pad_b(b4)], axis=0)  # [4, F] f32

    return (w1p.astype(jnp.bfloat16),
            w2p.astype(jnp.bfloat16),
            w3p.astype(jnp.bfloat16),
            w4p.astype(jnp.bfloat16),
            b_packed)


def final_physics_net(x, packed, *, num_classes=4, tb=4096):
    """x: [batch, input_size] f32 -> logits [batch, num_classes] f32."""
    w1, w2, w3, w4, b = packed
    batch, in_f = x.shape
    F = w1.shape[1]

    # Batch tile: multiple of 8 sublanes, clamped to (padded) batch.
    tb = max(8, min(tb, _round_up(batch, 8)))
    b_pad = _round_up(batch, tb)
    if b_pad != batch:
        x = jnp.pad(x, ((0, b_pad - batch), (0, 0)))
    x = x.astype(jnp.bfloat16)          # halve x HBM read + lane-padded VMEM footprint

    grid = (b_pad // tb,)

    # Advisory cost hint: this call is memory-bound, let XLA schedule around it.
    flops = 2 * b_pad * (in_f * F + F * F + F * F + F * num_classes)
    bytes_accessed = (x.size * x.dtype.itemsize
                      + sum(w.size * w.dtype.itemsize for w in (w1, w2, w3, w4))
                      + b.size * b.dtype.itemsize
                      + b_pad * num_classes * 4)
    cost = pl.CostEstimate(flops=flops, transcendentals=0,
                           bytes_accessed=bytes_accessed)

    # Rough per-step VMEM need (double-buffered x/out, lane-padded, + live temps
    # + resident weights), with headroom.  Kept well under v7x's 64 MiB physical.
    vmem_est = tb * (2 * F * 2          # x: 2 bufs, bf16, lane-padded
                     + 2 * F * 4        # out: 2 bufs, f32 (lane-padded tile)
                     + 4 * F * 4) \
        + 2 * 1024 * 1024               # weights/bias + slack
    vmem_limit = int(min(64 << 20, max(32 << 20, vmem_est)))

    out = pl.pallas_call(
        _mlp_kernel,
        out_shape=jax.ShapeDtypeStruct((b_pad, num_classes), jnp.float32),
        grid=grid,
        in_specs=[
            pl.BlockSpec((tb, in_f), lambda i: (i, 0)),      # x tile streams per step
            pl.BlockSpec(w1.shape, lambda i: (0, 0)),        # weights VMEM-resident
            pl.BlockSpec(w2.shape, lambda i: (0, 0)),
            pl.BlockSpec(w3.shape, lambda i: (0, 0)),
            pl.BlockSpec(w4.shape, lambda i: (0, 0)),
            pl.BlockSpec(b.shape, lambda i: (0, 0)),
        ],
        # Narrow output: last block dim == full array dim (num_classes) -> legal,
        # and ~32x less HBM writeback than the 128-wide f32 slab.
        out_specs=pl.BlockSpec((tb, num_classes), lambda i: (i, 0)),
        compiler_params=pltpu.CompilerParams(
            dimension_semantics=("parallel",),               # megacore on v7x
            vmem_limit_bytes=vmem_limit),
        cost_estimate=cost,
    )(x, w1, w2, w3, w4, b)

    if b_pad != batch:
        out = out[:batch]
    return out


def _reference(x, packed, num_classes):
    """Pure-JAX reference using the same bf16-matmul / f32-accumulate path."""
    w1, w2, w3, w4, b = packed

    def lin(h, w, brow):
        return jnp.dot(h.astype(jnp.bfloat16), w,
                       preferred_element_type=jnp.float32) + brow[None, :]

    h = jnp.maximum(lin(x, w1, b[0]), 0.0)
    h = jnp.maximum(lin(h, w2, b[1]), 0.0)
    h = jnp.maximum(lin(h, w3, b[2]), 0.0)
    return lin(h, w4, b[3])[:, :num_classes]


if __name__ == "__main__":
    input_size, hidden_size, num_classes = 8, 128, 4
    batch = 256          # small demo batch; tb=128 -> 2-step grid exercises tiling

    key = jax.random.PRNGKey(0)
    x = jax.random.normal(key, (batch, input_size), jnp.float32)

    params = make_params(input_size, hidden_size, num_classes, seed=0)

    out = final_physics_net(x, params, num_classes=num_classes, tb=128)
    out = jax.block_until_ready(out)

    ref = _reference(x, params, num_classes)
    assert out.shape == (batch, num_classes)
    assert jnp.allclose(out, ref, atol=1e-3, rtol=1e-3), \
        "Pallas output mismatch vs JAX reference"

    print("KERNEL_OK")
</pallas_src>

<mosaic_0001>
module attributes {stable_mosaic.version = 11 : i64} {
  func.func @_mlp_kernel(%arg0: i32, %arg1: memref<128x8xbf16, #tpu.memory_space<vmem>>, %arg2: memref<8x128xbf16, #tpu.memory_space<vmem>>, %arg3: memref<128x128xbf16, #tpu.memory_space<vmem>>, %arg4: memref<128x128xbf16, #tpu.memory_space<vmem>>, %arg5: memref<128x128xbf16, #tpu.memory_space<vmem>>, %arg6: memref<4x128xf32, #tpu.memory_space<vmem>>, %arg7: memref<128x4xf32, #tpu.memory_space<vmem>>) attributes {dimension_semantics = [#tpu.dimension_semantics<parallel>], iteration_bounds = array<i64: 2>, scalar_prefetch = 0 : i64, scratch_operands = 0 : i64, tpu.core_type = #tpu.core_type<tc>, window_params = [{transform_indices = @transform_0, window_bounds = array<i64: 128, 8>}, {pipeline_mode = #tpu.pipeline_mode<synchronous>, transform_indices = @transform_1, window_bounds = array<i64: 8, 128>}, {pipeline_mode = #tpu.pipeline_mode<synchronous>, transform_indices = @transform_2, window_bounds = array<i64: 128, 128>}, {pipeline_mode = #tpu.pipeline_mode<synchronous>, transform_indices = @transform_3, window_bounds = array<i64: 128, 128>}, {pipeline_mode = #tpu.pipeline_mode<synchronous>, transform_indices = @transform_4, window_bounds = array<i64: 128, 128>}, {pipeline_mode = #tpu.pipeline_mode<synchronous>, transform_indices = @transform_5, window_bounds = array<i64: 4, 128>}, {transform_indices = @transform_6, window_bounds = array<i64: 128, 4>}]} {
    %c0 = arith.constant 0 : index
    %c0_0 = arith.constant 0 : index
    %0 = vector.load %arg1[%c0, %c0_0] : memref<128x8xbf16, #tpu.memory_space<vmem>>, vector<128x8xbf16>
    %c0_1 = arith.constant 0 : index
    %c0_2 = arith.constant 0 : index
    %1 = vector.load %arg6[%c0_1, %c0_2] : memref<4x128xf32, #tpu.memory_space<vmem>>, vector<4x128xf32>
    %c0_3 = arith.constant 0 : index
    %c0_4 = arith.constant 0 : index
    %2 = vector.load %arg2[%c0_3, %c0_4] : memref<8x128xbf16, #tpu.memory_space<vmem>>, vector<8x128xbf16>
    %cst = arith.constant dense<0.000000e+00> : vector<128x128xf32>
    %3 = tpu.matmul %0, %2, %cst {dimension_numbers = #tpu.dot_dimension_numbers<[1], [0], [0], [1], [0, 0, 1, 1], [], []>} : vector<128x8xbf16>, vector<8x128xbf16>, vector<128x128xf32> -> vector<128x128xf32>
    %4 = vector.extract_strided_slice %1 {offsets = [0, 0], sizes = [1, 128], strides = [1, 1]} : vector<4x128xf32> to vector<1x128xf32>
    %5 = vector.broadcast %4 : vector<1x128xf32> to vector<128x128xf32>
    %6 = arith.addf %3, %5 : vector<128x128xf32>
    %cst_5 = arith.constant 0.000000e+00 : f32
    %7 = vector.broadcast %cst_5 : f32 to vector<128x128xf32>
    %8 = arith.maximumf %6, %7 : vector<128x128xf32>
    %9 = arith.truncf %8 : vector<128x128xf32> to vector<128x128xbf16>
    %c0_6 = arith.constant 0 : index
    %c0_7 = arith.constant 0 : index
    %10 = vector.load %arg3[%c0_6, %c0_7] : memref<128x128xbf16, #tpu.memory_space<vmem>>, vector<128x128xbf16>
    %cst_8 = arith.constant dense<0.000000e+00> : vector<128x128xf32>
    %11 = tpu.matmul %9, %10, %cst_8 {dimension_numbers = #tpu.dot_dimension_numbers<[1], [0], [0], [1], [0, 0, 1, 1], [], []>} : vector<128x128xbf16>, vector<128x128xbf16>, vector<128x128xf32> -> vector<128x128xf32>
    %12 = vector.extract_strided_slice %1 {offsets = [1, 0], sizes = [1, 128], strides = [1, 1]} : vector<4x128xf32> to vector<1x128xf32>
    %13 = vector.broadcast %12 : vector<1x128xf32> to vector<128x128xf32>
    %14 = arith.addf %11, %13 : vector<128x128xf32>
    %cst_9 = arith.constant 0.000000e+00 : f32
    %15 = vector.broadcast %cst_9 : f32 to vector<128x128xf32>
    %16 = arith.maximumf %14, %15 : vector<128x128xf32>
    %17 = arith.truncf %16 : vector<128x128xf32> to vector<128x128xbf16>
    %c0_10 = arith.constant 0 : index
    %c0_11 = arith.constant 0 : index
    %18 = vector.load %arg4[%c0_10, %c0_11] : memref<128x128xbf16, #tpu.memory_space<vmem>>, vector<128x128xbf16>
    %cst_12 = arith.constant dense<0.000000e+00> : vector<128x128xf32>
    %19 = tpu.matmul %17, %18, %cst_12 {dimension_numbers = #tpu.dot_dimension_numbers<[1], [0], [0], [1], [0, 0, 1, 1], [], []>} : vector<128x128xbf16>, vector<128x128xbf16>, vector<128x128xf32> -> vector<128x128xf32>
    %20 = vector.extract_strided_slice %1 {offsets = [2, 0], sizes = [1, 128], strides = [1, 1]} : vector<4x128xf32> to vector<1x128xf32>
    %21 = vector.broadcast %20 : vector<1x128xf32> to vector<128x128xf32>
    %22 = arith.addf %19, %21 : vector<128x128xf32>
    %cst_13 = arith.constant 0.000000e+00 : f32
    %23 = vector.broadcast %cst_13 : f32 to vector<128x128xf32>
    %24 = arith.maximumf %22, %23 : vector<128x128xf32>
    %25 = arith.truncf %24 : vector<128x128xf32> to vector<128x128xbf16>
    %c0_14 = arith.constant 0 : index
    %c0_15 = arith.constant 0 : index
    %26 = vector.load %arg5[%c0_14, %c0_15] : memref<128x128xbf16, #tpu.memory_space<vmem>>, vector<128x128xbf16>
    %cst_16 = arith.constant dense<0.000000e+00> : vector<128x128xf32>
    %27 = tpu.matmul %25, %26, %cst_16 {dimension_numbers = #tpu.dot_dimension_numbers<[1], [0], [0], [1], [0, 0, 1, 1], [], []>} : vector<128x128xbf16>, vector<128x128xbf16>, vector<128x128xf32> -> vector<128x128xf32>
    %28 = vector.extract_strided_slice %1 {offsets = [3, 0], sizes = [1, 128], strides = [1, 1]} : vector<4x128xf32> to vector<1x128xf32>
    %29 = vector.broadcast %28 : vector<1x128xf32> to vector<128x128xf32>
    %30 = arith.addf %27, %29 : vector<128x128xf32>
    %31 = vector.extract_strided_slice %30 {offsets = [0, 0], sizes = [128, 4], strides = [1, 1]} : vector<128x128xf32> to vector<128x4xf32>
    %c0_17 = arith.constant 0 : index
    %c0_18 = arith.constant 0 : index
    %32 = vector.load %arg7[%c0_17, %c0_18] : memref<128x4xf32, #tpu.memory_space<vmem>>, vector<128x4xf32>
    tpu.vector_store %arg7[%c0_17, %c0_18], %31 {strides = array<i32>} : memref<128x4xf32, #tpu.memory_space<vmem>>, vector<128x4xf32>,
    return
  }
  func.func @transform_0(%arg0: i32) -> (i32, i32) {
    %c0_i32 = arith.constant 0 : i32
    %c0_i32_0 = arith.constant 0 : i32
    return %arg0, %c0_i32 : i32, i32
  }
  func.func @transform_1(%arg0: i32) -> (i32, i32) {
    %c0_i32 = arith.constant 0 : i32
    %c0_i32_0 = arith.constant 0 : i32
    %c0_i32_1 = arith.constant 0 : i32
    return %c0_i32, %c0_i32_0 : i32, i32
  }
  func.func @transform_2(%arg0: i32) -> (i32, i32) {
    %c0_i32 = arith.constant 0 : i32
    %c0_i32_0 = arith.constant 0 : i32
    %c0_i32_1 = arith.constant 0 : i32
    return %c0_i32, %c0_i32_0 : i32, i32
  }
  func.func @transform_3(%arg0: i32) -> (i32, i32) {
    %c0_i32 = arith.constant 0 : i32
    %c0_i32_0 = arith.constant 0 : i32
    %c0_i32_1 = arith.constant 0 : i32
    return %c0_i32, %c0_i32_0 : i32, i32
  }
  func.func @transform_4(%arg0: i32) -> (i32, i32) {
    %c0_i32 = arith.constant 0 : i32
    %c0_i32_0 = arith.constant 0 : i32
    %c0_i32_1 = arith.constant 0 : i32
    return %c0_i32, %c0_i32_0 : i32, i32
  }
  func.func @transform_5(%arg0: i32) -> (i32, i32) {
    %c0_i32 = arith.constant 0 : i32
    %c0_i32_0 = arith.constant 0 : i32
    %c0_i32_1 = arith.constant 0 : i32
    return %c0_i32, %c0_i32_0 : i32, i32
  }
  func.func @transform_6(%arg0: i32) -> (i32, i32) {
    %c0_i32 = arith.constant 0 : i32
    %c0_i32_0 = arith.constant 0 : i32
    return %arg0, %c0_i32 : i32, i32
  }
}

</mosaic_0001>

<bundles_post_ra>
// kernel: tpu_custom_call.1
= control target key start
LH: loop header
LB: loop body
LE: loop exit
PB: predicated region body
PF: predicated region fallthrough
CT: control target
= control target key end

     0   :  { %11 = vsyncpa [#allocation3], 0  ;;  %s1191_s21 = smov 0   ;;  %s1363_s0 = inlined_call_operand.vmem [shape: bf16[256,8], index: 0, kind: input, shape index: {}]   ;;  %s1364_s1 = inlined_call_operand.vmem [shape: bf16[8,128], index: 1, kind: input, shape index: {}]   ;;  %s1365_s2 = inlined_call_operand.vmem [shape: bf16[128,128], index: 2, kind: input, shape index: {}]   ;;  %s1366_s3 = inlined_call_operand.vmem [shape: bf16[128,128], index: 3, kind: input, shape index: {}]   ;;  %s1367_s4 = inlined_call_operand.hbm [shape: bf16[128,128], index: 4, kind: input, shape index: {}]   ;;  %s1368_s5 = inlined_call_operand.vmem [shape: f32[4,128], index: 5, kind: input, shape index: {}]   ;;  %s1369_s6 = inlined_call_operand.vmem [shape: f32[256,4], index: 6, kind: output, shape index: {}]  }
   0x1 LB: > { %s199_s24 = sshll.u32 %s1367_s4, 4  ;;  %s909_s25 = sadd.s32 4294967295, %s1151_s21   ;;  %s1151_s21 = sphi %s1191_s21, %s17_s21   ;;  %s200_s24 = int_to_ptr.hbm [resolvable:$true] %s199_s24 }
   0x2   : > { %p911_p0 = scmp.ge.s32.totalorder %s1151_s21, 1  ;;  %p179_p1 = scmp.lt.s32.totalorder %s1151_s21, 3 }
   0x3   : > { %p1098_p2 = scmp.eq.s32.totalorder %s909_s25, 0  ;;  %s1153_s26 = smov [#allocation2]  }
   0x4   : > { %p180_p3 = pnand %p911_p0, %p179_p1  ;;  %s201_s27 = sshll.u32 %s1153_s26, 4  ;;  %s202_s27 = int_to_ptr.vmem [resolvable:$true] %s201_s27 }
   0x5   : > { %s1154_s28 = smov 64   ;;  %s1155_s29 = smov 4  }
   0x6   : > { %p1094_p4 = pneg %p180_p3  ;;  %229 = sbr.rel (%p180_p3) target bundleno = 700 (0x2bc), region = 44 }
   0x8   : > { %p1095_p5 = pnand %p1098_p2, %p1094_p4 }
   0xa   : > { %1097 = dma.hbm_to_vmem [thread:$0]  (!%p1095_p5), %s200_s24, 1024, %s202_s27, [#allocation3], %s1154_s28, %s1154_s28, %s1155_s29  }
   0xb   : > { %1146 = dma.done.wait (%p1098_p2), [#allocation3], 1024  }
   0xc   : > { %1148 = vsyncadd (%p1098_p2), [#allocation3], 4294966272  ;;  %s916_s30 = sshll.u32 %s909_s25, 4  ;;  %vm357_vm0 = vcmask 1043456   ;;  %v290_v0 = vld [vmem:[%s1364_s1] sm:$0xf] }
   0xd   : > { %p261_p6 = scmp.lt.s32.totalorder %s916_s30, 31  ;;  %v359_v1 = vsel %vm357_vm0, %v290_v0, 0  ;;  %vm332_vm1 = vcmask 64512   ;;  %v1073_v7 = vld [vmem:[%s1365_s2 + $0x38] sm:$0xff]  ;;  %v1072_v9 = vld [vmem:[%s1365_s2 + $0x30] sm:$0xff]  ;;  %v1071_v10 = vld [vmem:[%s1365_s2 + $0x28] sm:$0xff] }
   0xe   : > { %368 = vmatpush.bf16.msra.mxu0 %v359_v1  ;;  %499 = vmatpush.bf16.msra.mxu1 %v1073_v7  ;;  %v1070_v11 = vld [vmem:[%s1365_s2 + $0x20] sm:$0xff]  ;;  %v1069_v12 = vld [vmem:[%s1365_s2 + $0x18] sm:$0xff]  ;;  %v1068_v14 = vld [vmem:[%s1365_s2 + $0x10] sm:$0xff]  ;;  %vm824_vm2 = vcmask 31744  }
   0xf   : > { %s1371_s30 = smov (!%p261_p6, %s916_s30), 31  ;;  %v1067_v15 = vld [vmem:[%s1365_s2 + $0x8] sm:$0xff]  ;;  %v1066_v16 = vld [vmem:[%s1365_s2] sm:$0xff]  ;;  %v1081_v59 = vld [vmem:[%s1366_s3 + $0x38] sm:$0xff] }
  0x10   : > { %s917_s7 = sshll.u32 %s1371_s30, 2  ;;  %v1256_v18 = vld [vmem:[%s1368_s5] sm:$0xf]  ;;  %637 = vmatpush.bf16.msra.mxu2 %v1081_v59  ;;  %v1080_v63 = vld [vmem:[%s1366_s3 + $0x30] sm:$0xff]  ;;  %v1079_v1 = vld [vmem:[%s1366_s3 + $0x28] sm:$0xff]  ;;  %s919_s26 = sshll.u32 %s1371_s30, 3 }
  0x11   : > { %s1208_s10 = scalar_lea.vmem %s1363_s0, %s917_s7  ;;  %v1259_v20 = vperm.slane %v1256_v18, 0  ;;  %s1326_s29 = scalar_lea.vmem %s1369_s6, %s919_s26 }
  0x12   : > { %v1058_v2 = vld [vmem:[%s1208_s10] sm:$0xff]  ;;  %v1059_v3 = vld [vmem:[%s1208_s10 + $0x8] sm:$0xff]  ;;  %v1060_v4 = vld [vmem:[%s1208_s10 + $0x10] sm:$0xff]  ;;  %500 = vmatpush.bf16.msra.mxu1 %v1072_v9 }
  0x13   : > { %952 = vmatmul.msk.bf16.vlgmr.msra.gmra.mxu0 %vm332_vm1, %v1058_v2  ;;  %v1061_v5 = vld [vmem:[%s1208_s10 + $0x18] sm:$0xff]  ;;  %v1062_v6 = vld [vmem:[%s1208_s10 + $0x20] sm:$0xff]  ;;  %v1063_v8 = vld [vmem:[%s1208_s10 + $0x28] sm:$0xff] }
  0x14   : > { %v1064_v13 = vld [vmem:[%s1208_s10 + $0x30] sm:$0xff]  ;;  %v1065_v17 = vld [vmem:[%s1208_s10 + $0x38] sm:$0xff]  ;;  %638 = vmatpush.bf16.msra.mxu2 %v1080_v63  ;;  %v1078_v2 = vld [vmem:[%s1366_s3 + $0x20] sm:$0xff] }
  0x16   : > { %501 = vmatpush.bf16.msra.mxu1 %v1071_v10  ;;  %v1076_v10 = vld [vmem:[%s1366_s3 + $0x10] sm:$0xff] }
  0x18   : > { %639 = vmatpush.bf16.msra.mxu2 %v1079_v1 }
  0x1a   : > { %502 = vmatpush.bf16.msra.mxu1 %v1070_v11 }
  0x1c   : > { %640 = vmatpush.bf16.msra.mxu2 %v1078_v2  ;;  %v1088_v2 = vld [vmem:[#allocation2 + $0x30] sm:$0xff] }
  0x1e   : > { %503 = vmatpush.bf16.msra.mxu1 %v1069_v12  ;;  %v1075_v12 = vld [vmem:[%s1366_s3 + $0x8] sm:$0xff] }
  0x22   : > { %504 = vmatpush.bf16.msra.mxu1 %v1068_v14 }
  0x23   : > { %953 = vmatmul.msk.bf16.gmra.mxu0 %vm332_vm1, %v1059_v3 }
  0x26   : > { %505 = vmatpush.bf16.msra.mxu1 %v1067_v15 }
  0x2a   : > { %506 = vmatpush.bf16.msra.mxu1 %v1066_v16 }
  0x33   : > { %954 = vmatmul.msk.bf16.gmra.mxu0 %vm332_vm1, %v1060_v4 }
  0x43   : > { %955 = vmatmul.msk.bf16.gmra.mxu0 %vm332_vm1, %v1061_v5 }
  0x53   : > { %956 = vmatmul.msk.bf16.gmra.mxu0 %vm332_vm1, %v1062_v6  ;;  %v1077_v6 = vld [vmem:[%s1366_s3 + $0x18] sm:$0xff] }
  0x54   : > { %641 = vmatpush.bf16.msra.mxu2 %v1077_v6 }
  0x58   : > { %642 = vmatpush.bf16.msra.mxu2 %v1076_v10 }
  0x5c   : > { %643 = vmatpush.bf16.msra.mxu2 %v1075_v12  ;;  %v1085_v12 = vld [vmem:[#allocation2 + $0x18] sm:$0xff] }
  0x63   : > { %957 = vmatmul.msk.bf16.gmra.mxu0 %vm332_vm1, %v1063_v8 }
  0x73   : > { %958 = vmatmul.msk.bf16.gmra.mxu0 %vm332_vm1, %v1064_v13  ;;  %v1074_v13 = vld [vmem:[%s1366_s3] sm:$0xff] }
  0x74   : > { %644 = vmatpush.bf16.msra.mxu2 %v1074_v13  ;;  %v1084_v13 = vld [vmem:[#allocation2 + $0x10] sm:$0xff] }
  0x83   : > { %959 = vmatmul.msk.bf16.gmra.mxu0 %vm332_vm1, %v1065_v17 }
  0x90   : > { %v370_v19 = vpop.f32.mrf.mxu0 }
  0x91   : > { %v371_v21 = vadd.f32 %v370_v19, %v1259_v20 }
  0x93   : > { %v410_v24 = vmax.f32 %v371_v21, 0.0 }
  0x98   : > { %v372_v22 = vpop.f32.mrf.mxu0 }
  0x99   : > { %v373_v23 = vadd.f32 %v372_v22, %v1259_v20 }
  0x9b   : > { %v411_v25 = vmax.f32 %v373_v23, 0.0  ;;  %v1302_v23 = vperm.slane %v1256_v18, 1 }
  0x9d   : > { %v426_v26 = vpack.c.bf16 %v411_v25, %v410_v24 }
  0x9f   : > { %507 = vmatmul.bf16.vlgmr.msra.gmra.mxu1 %v426_v26 }
  0xa0   : > { %v375_v27 = vpop.f32.mrf.mxu0 }
  0xa1   : > { %v376_v28 = vadd.f32 %v375_v27, %v1259_v20 }
  0xa3   : > { %v412_v31 = vmax.f32 %v376_v28, 0.0 }
  0xa8   : > { %v377_v29 = vpop.f32.mrf.mxu0 }
  0xa9   : > { %v378_v30 = vadd.f32 %v377_v29, %v1259_v20 }
  0xab   : > { %v413_v32 = vmax.f32 %v378_v30, 0.0 }
  0xad   : > { %v427_v33 = vpack.c.bf16 %v413_v32, %v412_v31 }
  0xaf   : > { %512 = vmatmul.bf16.gmra.mxu1 %v427_v33 }
  0xb0   : > { %v380_v34 = vpop.f32.mrf.mxu0 }
  0xb1   : > { %v381_v35 = vadd.f32 %v380_v34, %v1259_v20 }
  0xb3   : > { %v414_v38 = vmax.f32 %v381_v35, 0.0 }
  0xb8   : > { %v382_v36 = vpop.f32.mrf.mxu0 }
  0xb9   : > { %v383_v37 = vadd.f32 %v382_v36, %v1259_v20 }
  0xbb   : > { %v415_v39 = vmax.f32 %v383_v37, 0.0 }
  0xbd   : > { %v428_v40 = vpack.c.bf16 %v415_v39, %v414_v38 }
  0xbf   : > { %517 = vmatmul.bf16.gmra.mxu1 %v428_v40 }
  0xc0   : > { %v385_v41 = vpop.f32.mrf.mxu0 }
  0xc1   : > { %v386_v42 = vadd.f32 %v385_v41, %v1259_v20 }
  0xc3   : > { %v416_v45 = vmax.f32 %v386_v42, 0.0 }
  0xc8   : > { %v387_v43 = vpop.f32.mrf.mxu0 }
  0xc9   : > { %v388_v44 = vadd.f32 %v387_v43, %v1259_v20 }
  0xcb   : > { %v417_v46 = vmax.f32 %v388_v44, 0.0 }
  0xcd   : > { %v429_v47 = vpack.c.bf16 %v417_v46, %v416_v45 }
  0xcf   : > { %522 = vmatmul.bf16.gmra.mxu1 %v429_v47 }
  0xd0   : > { %v390_v48 = vpop.f32.mrf.mxu0 }
  0xd1   : > { %v391_v49 = vadd.f32 %v390_v48, %v1259_v20 }
  0xd3   : > { %v418_v52 = vmax.f32 %v391_v49, 0.0 }
  0xd8   : > { %v392_v50 = vpop.f32.mrf.mxu0 }
  0xd9   : > { %v393_v51 = vadd.f32 %v392_v50, %v1259_v20 }
  0xdb   : > { %v419_v53 = vmax.f32 %v393_v51, 0.0 }
  0xdd   : > { %v430_v54 = vpack.c.bf16 %v419_v53, %v418_v52 }
  0xdf   : > { %527 = vmatmul.bf16.gmra.mxu1 %v430_v54 }
  0xe0   : > { %v395_v55 = vpop.f32.mrf.mxu0 }
  0xe1   : > { %v396_v56 = vadd.f32 %v395_v55, %v1259_v20 }
  0xe3   : > { %v420_v60 = vmax.f32 %v396_v56, 0.0 }
  0xe8   : > { %v397_v57 = vpop.f32.mrf.mxu0 }
  0xe9   : > { %v398_v58 = vadd.f32 %v397_v57, %v1259_v20 }
  0xeb   : > { %v421_v61 = vmax.f32 %v398_v58, 0.0 }
  0xed   : > { %v431_v62 = vpack.c.bf16 %v421_v61, %v420_v60 }
  0xef   : > { %532 = vmatmul.bf16.gmra.mxu1 %v431_v62 }
  0xf0   : > { %v400_v0 = vpop.f32.mrf.mxu0 }
  0xf1   : > { %v401_v3 = vadd.f32 %v400_v0, %v1259_v20  ;;  %v1089_v0 = vld [vmem:[#allocation2 + $0x38] sm:$0xff] }
  0xf2   : > { %775 = vmatpush.bf16.msra.mxu3 %v1089_v0 }
  0xf3   : > { %v422_v7 = vmax.f32 %v401_v3, 0.0  ;;  %v1087_v3 = vld [vmem:[#allocation2 + $0x28] sm:$0xff] }
  0xf6   : > { %776 = vmatpush.bf16.msra.mxu3 %v1088_v2 }
  0xf8   : > { %v402_v4 = vpop.f32.mrf.mxu0 }
  0xf9   : > { %v403_v5 = vadd.f32 %v402_v4, %v1259_v20 }
  0xfa   : > { %777 = vmatpush.bf16.msra.mxu3 %v1087_v3 }
  0xfb   : > { %v423_v8 = vmax.f32 %v403_v5, 0.0 }
  0xfd   : > { %v432_v9 = vpack.c.bf16 %v423_v8, %v422_v7  ;;  %v1086_v7 = vld [vmem:[#allocation2 + $0x20] sm:$0xff] }
  0xfe   : > { %778 = vmatpush.bf16.msra.mxu3 %v1086_v7 }
  0xff   : > { %537 = vmatmul.bf16.gmra.mxu1 %v432_v9 }
 0x100   : > { %v405_v11 = vpop.f32.mrf.mxu0 }
 0x101   : > { %v406_v14 = vadd.f32 %v405_v11, %v1259_v20 }
 0x102   : > { %779 = vmatpush.bf16.msra.mxu3 %v1085_v12 }
 0x103   : > { %v424_v17 = vmax.f32 %v406_v14, 0.0 }
 0x106   : > { %780 = vmatpush.bf16.msra.mxu3 %v1084_v13 }
 0x108   : > { %v407_v15 = vpop.f32.mrf.mxu0 }
 0x109   : > { %v408_v16 = vadd.f32 %v407_v15, %v1259_v20 }
 0x10b   : > { %v425_v19 = vmax.f32 %v408_v16, 0.0  ;;  %v1083_v16 = vld [vmem:[#allocation2 + $0x8] sm:$0xff] }
 0x10c   : > { %781 = vmatpush.bf16.msra.mxu3 %v1083_v16  ;;  %v726_v16 = vperm.slane %v1256_v18, 3 }
 0x10d   : > { %v433_v21 = vpack.c.bf16 %v425_v19, %v424_v17 }
 0x10f   : > { %542 = vmatmul.bf16.gmra.mxu1 %v433_v21 }
 0x11c   : > { %v508_v22 = vpop.f32.mrf.mxu1 }
 0x11d   : > { %v509_v24 = vadd.f32 %v508_v22, %v1302_v23  ;;  %v1082_v22 = vld [vmem:[#allocation2] sm:$0xff] }
 0x11e   : > { %782 = vmatpush.bf16.msra.mxu3 %v1082_v22 }
 0x11f   : > { %v548_v27 = vmax.f32 %v509_v24, 0.0 }
 0x124   : > { %v510_v25 = vpop.f32.mrf.mxu1 }
 0x125   : > { %v511_v26 = vadd.f32 %v510_v25, %v1302_v23 }
 0x127   : > { %v549_v28 = vmax.f32 %v511_v26, 0.0  ;;  %v588_v26 = vperm.slane %v1256_v18, 2 }
 0x129   : > { %v564_v29 = vpack.c.bf16 %v549_v28, %v548_v27 }
 0x12b   : > { %645 = vmatmul.bf16.vlgmr.msra.gmra.mxu2 %v564_v29 }
 0x12c   : > { %v513_v30 = vpop.f32.mrf.mxu1 }
 0x12d   : > { %v514_v20 = vadd.f32 %v513_v30, %v1302_v23 }
 0x12f   : > { %v550_v33 = vmax.f32 %v514_v20, 0.0 }
 0x134   : > { %v515_v31 = vpop.f32.mrf.mxu1 }
 0x135   : > { %v516_v32 = vadd.f32 %v515_v31, %v1302_v23 }
 0x137   : > { %v551_v34 = vmax.f32 %v516_v32, 0.0 }
 0x139   : > { %v565_v35 = vpack.c.bf16 %v551_v34, %v550_v33 }
 0x13b   : > { %650 = vmatmul.bf16.gmra.mxu2 %v565_v35 }
 0x13c   : > { %v518_v36 = vpop.f32.mrf.mxu1 }
 0x13d   : > { %v519_v37 = vadd.f32 %v518_v36, %v1302_v23 }
 0x13f   : > { %v552_v40 = vmax.f32 %v519_v37, 0.0 }
 0x144   : > { %v520_v38 = vpop.f32.mrf.mxu1 }
 0x145   : > { %v521_v39 = vadd.f32 %v520_v38, %v1302_v23 }
 0x147   : > { %v553_v41 = vmax.f32 %v521_v39, 0.0 }
 0x149   : > { %v566_v42 = vpack.c.bf16 %v553_v41, %v552_v40 }
 0x14b   : > { %655 = vmatmul.bf16.gmra.mxu2 %v566_v42 }
 0x14c   : > { %v523_v43 = vpop.f32.mrf.mxu1 }
 0x14d   : > { %v524_v44 = vadd.f32 %v523_v43, %v1302_v23 }
 0x14f   : > { %v554_v47 = vmax.f32 %v524_v44, 0.0 }
 0x154   : > { %v525_v45 = vpop.f32.mrf.mxu1 }
 0x155   : > { %v526_v46 = vadd.f32 %v525_v45, %v1302_v23 }
 0x157   : > { %v555_v48 = vmax.f32 %v526_v46, 0.0 }
 0x159   : > { %v567_v49 = vpack.c.bf16 %v555_v48, %v554_v47 }
 0x15b   : > { %660 = vmatmul.bf16.gmra.mxu2 %v567_v49 }
 0x15c   : > { %v528_v50 = vpop.f32.mrf.mxu1 }
 0x15d   : > { %v529_v51 = vadd.f32 %v528_v50, %v1302_v23 }
 0x15f   : > { %v556_v54 = vmax.f32 %v529_v51, 0.0 }
 0x164   : > { %v530_v52 = vpop.f32.mrf.mxu1 }
 0x165   : > { %v531_v53 = vadd.f32 %v530_v52, %v1302_v23 }
 0x167   : > { %v557_v55 = vmax.f32 %v531_v53, 0.0 }
 0x169   : > { %v568_v56 = vpack.c.bf16 %v557_v55, %v556_v54 }
 0x16b   : > { %665 = vmatmul.bf16.gmra.mxu2 %v568_v56 }
 0x16c   : > { %v533_v57 = vpop.f32.mrf.mxu1 }
 0x16d   : > { %v534_v58 = vadd.f32 %v533_v57, %v1302_v23 }
 0x16f   : > { %v558_v61 = vmax.f32 %v534_v58, 0.0 }
 0x174   : > { %v535_v59 = vpop.f32.mrf.mxu1 }
 0x175   : > { %v536_v60 = vadd.f32 %v535_v59, %v1302_v23 }
 0x177   : > { %v559_v62 = vmax.f32 %v536_v60, 0.0 }
 0x179   : > { %v569_v63 = vpack.c.bf16 %v559_v62, %v558_v61 }
 0x17b   : > { %670 = vmatmul.bf16.gmra.mxu2 %v569_v63 }
 0x17c   : > { %v538_v1 = vpop.f32.mrf.mxu1 }
 0x17d   : > { %v539_v4 = vadd.f32 %v538_v1, %v1302_v23 }
 0x17f   : > { %v560_v8 = vmax.f32 %v539_v4, 0.0 }
 0x184   : > { %v540_v5 = vpop.f32.mrf.mxu1 }
 0x185   : > { %v541_v6 = vadd.f32 %v540_v5, %v1302_v23 }
 0x187   : > { %v561_v9 = vmax.f32 %v541_v6, 0.0 }
 0x189   : > { %v570_v10 = vpack.c.bf16 %v561_v9, %v560_v8 }
 0x18b   : > { %675 = vmatmul.bf16.gmra.mxu2 %v570_v10 }
 0x18c   : > { %v543_v11 = vpop.f32.mrf.mxu1 }
 0x18d   : > { %v544_v14 = vadd.f32 %v543_v11, %v1302_v23 }
 0x18f   : > { %v562_v19 = vmax.f32 %v544_v14, 0.0 }
 0x194   : > { %v545_v15 = vpop.f32.mrf.mxu1 }
 0x195   : > { %v546_v17 = vadd.f32 %v545_v15, %v1302_v23 }
 0x197   : > { %v563_v21 = vmax.f32 %v546_v17, 0.0 }
 0x199   : > { %v571_v24 = vpack.c.bf16 %v563_v21, %v562_v19 }
 0x19b   : > { %680 = vmatmul.bf16.gmra.mxu2 %v571_v24 }
 0x1ae   : > { %v646_v25 = vpop.f32.mrf.mxu2 }
 0x1af   : > { %v647_v27 = vadd.f32 %v646_v25, %v588_v26 }
 0x1b1   : > { %v686_v30 = vmax.f32 %v647_v27, 0.0 }
 0x1b6   : > { %v648_v28 = vpop.f32.mrf.mxu2 }
 0x1b7   : > { %v649_v29 = vadd.f32 %v648_v28, %v588_v26 }
 0x1b9   : > { %v687_v20 = vmax.f32 %v649_v29, 0.0 }
 0x1bb   : > { %v702_v31 = vpack.c.bf16 %v687_v20, %v686_v30 }
 0x1bd   : > { %783 = vmatmul.bf16.vlgmr.msra.gmra.mxu3 %v702_v31 }
 0x1be   : > { %v651_v32 = vpop.f32.mrf.mxu2 }
 0x1bf   : > { %v652_v33 = vadd.f32 %v651_v32, %v588_v26 }
 0x1c1   : > { %v688_v35 = vmax.f32 %v652_v33, 0.0 }
 0x1c6   : > { %v653_v23 = vpop.f32.mrf.mxu2 }
 0x1c7   : > { %v654_v34 = vadd.f32 %v653_v23, %v588_v26 }
 0x1c9   : > { %v689_v36 = vmax.f32 %v654_v34, 0.0 }
 0x1cb   : > { %v703_v37 = vpack.c.bf16 %v689_v36, %v688_v35 }
 0x1cd   : > { %788 = vmatmul.bf16.gmra.mxu3 %v703_v37 }
 0x1ce   : > { %v656_v38 = vpop.f32.mrf.mxu2 }
 0x1cf   : > { %v657_v39 = vadd.f32 %v656_v38, %v588_v26 }
 0x1d1   : > { %v690_v42 = vmax.f32 %v657_v39, 0.0 }
 0x1d6   : > { %v658_v40 = vpop.f32.mrf.mxu2 }
 0x1d7   : > { %v659_v41 = vadd.f32 %v658_v40, %v588_v26 }
 0x1d9   : > { %v691_v43 = vmax.f32 %v659_v41, 0.0 }
 0x1db   : > { %v704_v44 = vpack.c.bf16 %v691_v43, %v690_v42 }
 0x1dd   : > { %793 = vmatmul.bf16.gmra.mxu3 %v704_v44 }
 0x1de   : > { %v661_v45 = vpop.f32.mrf.mxu2 }
 0x1df   : > { %v662_v46 = vadd.f32 %v661_v45, %v588_v26 }
 0x1e1   : > { %v692_v49 = vmax.f32 %v662_v46, 0.0 }
 0x1e6   : > { %v663_v47 = vpop.f32.mrf.mxu2 }
 0x1e7   : > { %v664_v48 = vadd.f32 %v663_v47, %v588_v26 }
 0x1e9   : > { %v693_v50 = vmax.f32 %v664_v48, 0.0 }
 0x1eb   : > { %v705_v51 = vpack.c.bf16 %v693_v50, %v692_v49 }
 0x1ed   : > { %798 = vmatmul.bf16.gmra.mxu3 %v705_v51 }
 0x1ee   : > { %v666_v52 = vpop.f32.mrf.mxu2 }
 0x1ef   : > { %v667_v53 = vadd.f32 %v666_v52, %v588_v26 }
 0x1f1   : > { %v694_v56 = vmax.f32 %v667_v53, 0.0 }
 0x1f6   : > { %v668_v54 = vpop.f32.mrf.mxu2 }
 0x1f7   : > { %v669_v55 = vadd.f32 %v668_v54, %v588_v26 }
 0x1f9   : > { %v695_v57 = vmax.f32 %v669_v55, 0.0 }
 0x1fb   : > { %v706_v58 = vpack.c.bf16 %v695_v57, %v694_v56 }
 0x1fd   : > { %803 = vmatmul.bf16.gmra.mxu3 %v706_v58 }
 0x1fe   : > { %v671_v59 = vpop.f32.mrf.mxu2 }
 0x1ff   : > { %v672_v60 = vadd.f32 %v671_v59, %v588_v26 }
 0x201   : > { %v696_v63 = vmax.f32 %v672_v60, 0.0 }
 0x206   : > { %v673_v61 = vpop.f32.mrf.mxu2 }
 0x207   : > { %v674_v62 = vadd.f32 %v673_v61, %v588_v26 }
 0x209   : > { %v697_v0 = vmax.f32 %v674_v62, 0.0 }
 0x20b   : > { %v707_v1 = vpack.c.bf16 %v697_v0, %v696_v63 }
 0x20d   : > { %808 = vmatmul.bf16.gmra.mxu3 %v707_v1 }
 0x20e   : > { %v676_v2 = vpop.f32.mrf.mxu2 }
 0x20f   : > { %v677_v3 = vadd.f32 %v676_v2, %v588_v26 }
 0x211   : > { %v698_v6 = vmax.f32 %v677_v3, 0.0 }
 0x216   : > { %v678_v4 = vpop.f32.mrf.mxu2 }
 0x217   : > { %v679_v5 = vadd.f32 %v678_v4, %v588_v26 }
 0x219   : > { %v699_v7 = vmax.f32 %v679_v5, 0.0 }
 0x21b   : > { %v708_v8 = vpack.c.bf16 %v699_v7, %v698_v6 }
 0x21d   : > { %813 = vmatmul.bf16.gmra.mxu3 %v708_v8 }
 0x21e   : > { %v681_v9 = vpop.f32.mrf.mxu2 }
 0x21f   : > { %v682_v10 = vadd.f32 %v681_v9, %v588_v26 }
 0x221   : > { %v700_v13 = vmax.f32 %v682_v10, 0.0 }
 0x226   : > { %v683_v11 = vpop.f32.mrf.mxu2 }
 0x227   : > { %v684_v12 = vadd.f32 %v683_v11, %v588_v26 }
 0x229   : > { %v701_v14 = vmax.f32 %v684_v12, 0.0 }
 0x22b   : > { %v709_v15 = vpack.c.bf16 %v701_v14, %v700_v13 }
 0x22d   : > { %818 = vmatmul.bf16.gmra.mxu3 %v709_v15 }
 0x240   : > { %v784_v17 = vpop.f32.mrf.mxu3 }
 0x241   : > { %v785_v19 = vadd.f32 %v784_v17, %v726_v16 }
 0x243   : > { %825 = vst.msk [vmem:[%s1326_s29] sm:$0xff] %vm824_vm2, %v785_v19 }
 0x248   : > { %v786_v21 = vpop.f32.mrf.mxu3 }
 0x249   : > { %v787_v22 = vadd.f32 %v786_v21, %v726_v16 }
 0x24b   : > { %826 = vst.msk [vmem:[%s1326_s29 + $0x8] sm:$0xff] %vm824_vm2, %v787_v22 }
 0x250   : > { %v789_v18 = vpop.f32.mrf.mxu3 }
 0x251   : > { %v790_v24 = vadd.f32 %v789_v18, %v726_v16 }
 0x253   : > { %827 = vst.msk [vmem:[%s1326_s29 + $0x10] sm:$0xff] %vm824_vm2, %v790_v24 }
 0x258   : > { %v791_v25 = vpop.f32.mrf.mxu3 }
 0x259   : > { %v792_v26 = vadd.f32 %v791_v25, %v726_v16 }
 0x25b   : > { %828 = vst.msk [vmem:[%s1326_s29 + $0x18] sm:$0xff] %vm824_vm2, %v792_v26 }
 0x260   : > { %v794_v27 = vpop.f32.mrf.mxu3 }
 0x261   : > { %v795_v28 = vadd.f32 %v794_v27, %v726_v16 }
 0x263   : > { %829 = vst.msk [vmem:[%s1326_s29 + $0x20] sm:$0xff] %vm824_vm2, %v795_v28 }
 0x268   : > { %v796_v29 = vpop.f32.mrf.mxu3 }
 0x269   : > { %v797_v30 = vadd.f32 %v796_v29, %v726_v16 }
 0x26b   : > { %830 = vst.msk [vmem:[%s1326_s29 + $0x28] sm:$0xff] %vm824_vm2, %v797_v30 }
 0x270   : > { %v799_v20 = vpop.f32.mrf.mxu3 }
 0x271   : > { %v800_v31 = vadd.f32 %v799_v20, %v726_v16 }
 0x273   : > { %831 = vst.msk [vmem:[%s1326_s29 + $0x30] sm:$0xff] %vm824_vm2, %v800_v31 }
 0x278   : > { %v801_v32 = vpop.f32.mrf.mxu3 }
 0x279   : > { %v802_v33 = vadd.f32 %v801_v32, %v726_v16 }
 0x27b   : > { %832 = vst.msk [vmem:[%s1326_s29 + $0x38] sm:$0xff] %vm824_vm2, %v802_v33 }
 0x280   : > { %v804_v23 = vpop.f32.mrf.mxu3 }
 0x281   : > { %v805_v34 = vadd.f32 %v804_v23, %v726_v16 }
 0x283   : > { %833 = vst.msk [vmem:[%s1326_s29 + $0x40] sm:$0xff] %vm824_vm2, %v805_v34 }
 0x288   : > { %v806_v35 = vpop.f32.mrf.mxu3 }
 0x289   : > { %v807_v36 = vadd.f32 %v806_v35, %v726_v16 }
 0x28b   : > { %834 = vst.msk [vmem:[%s1326_s29 + $0x48] sm:$0xff] %vm824_vm2, %v807_v36 }
 0x290   : > { %v809_v37 = vpop.f32.mrf.mxu3 }
 0x291   : > { %v810_v38 = vadd.f32 %v809_v37, %v726_v16 }
 0x293   : > { %835 = vst.msk [vmem:[%s1326_s29 + $0x50] sm:$0xff] %vm824_vm2, %v810_v38 }
 0x298   : > { %v811_v39 = vpop.f32.mrf.mxu3 }
 0x299   : > { %v812_v40 = vadd.f32 %v811_v39, %v726_v16 }
 0x29b   : > { %836 = vst.msk [vmem:[%s1326_s29 + $0x58] sm:$0xff] %vm824_vm2, %v812_v40 }
 0x2a0   : > { %v814_v41 = vpop.f32.mrf.mxu3 }
 0x2a1   : > { %v815_v42 = vadd.f32 %v814_v41, %v726_v16 }
 0x2a3   : > { %837 = vst.msk [vmem:[%s1326_s29 + $0x60] sm:$0xff] %vm824_vm2, %v815_v42 }
 0x2a8   : > { %v816_v43 = vpop.f32.mrf.mxu3 }
 0x2a9   : > { %v817_v44 = vadd.f32 %v816_v43, %v726_v16 }
 0x2ab   : > { %838 = vst.msk [vmem:[%s1326_s29 + $0x68] sm:$0xff] %vm824_vm2, %v817_v44 }
 0x2b0   : > { %v819_v45 = vpop.f32.mrf.mxu3 }
 0x2b1   : > { %v820_v46 = vadd.f32 %v819_v45, %v726_v16 }
 0x2b3   : > { %839 = vst.msk [vmem:[%s1326_s29 + $0x70] sm:$0xff] %vm824_vm2, %v820_v46 }
 0x2b8   : > { %v821_v47 = vpop.f32.mrf.mxu3 }
 0x2b9   : > { %v822_v48 = vadd.f32 %v821_v47, %v726_v16 }
 0x2bb   : > { %840 = vst.msk [vmem:[%s1326_s29 + $0x78] sm:$0xff] %vm824_vm2, %v822_v48 }
 0x2bc PF: > { %s17_s21 = sadd.s32 1, %s1151_s21  }
 0x2bd   : > { %p14_p7 = scmp.ge.s32.totalorder %s17_s21, 4  }
 0x2bf   :  { %16 = sbr.rel (!%p14_p7) target bundleno = 1 (0x1), region = 79 }
 0x2c4   :  { %863 = vsyncpa [#allocation3], 1 }
 0x2c5   :  { %865 = vsyncpa [#allocation3 + $0x1], 1 }

</bundles_post_ra>
